<compile_context>
chip_gen: v5e
topology: v5e:2x2
jax: 0.10.0
libtpu: 0.0.40
codegen_flags: <defaults>
</compile_context>

<pallas_src>
import functools

import jax
import jax.numpy as jnp
from jax.experimental import pallas as pl
from jax.experimental.pallas import tpu as pltpu


def _ln_kernel_nobias(x_ref, g_ref, o_ref, *, eps, inv_c):
    # x_ref: (1, C, T) block -> take the (C, T) slab, accumulate in f32.
    x = x_ref[0].astype(jnp.float32)                         # (C, T)
    mean = jnp.sum(x, axis=0, keepdims=True) * inv_c         # (1, T)
    mean_sq = jnp.sum(x * x, axis=0, keepdims=True) * inv_c  # (1, T)
    var = jnp.maximum(mean_sq - mean * mean, 0.0)            # unbiased=False
    inv = jax.lax.rsqrt(var + eps)                           # (1, T)
    g = g_ref[...].astype(jnp.float32)                       # (C, 1)
    y = (x - mean) * inv * g                                 # (C, T)
    o_ref[0] = y.astype(o_ref.dtype)


def _ln_kernel_bias(x_ref, g_ref, b_ref, o_ref, *, eps, inv_c):
    x = x_ref[0].astype(jnp.float32)                         # (C, T)
    mean = jnp.sum(x, axis=0, keepdims=True) * inv_c         # (1, T)
    mean_sq = jnp.sum(x * x, axis=0, keepdims=True) * inv_c  # (1, T)
    var = jnp.maximum(mean_sq - mean * mean, 0.0)
    inv = jax.lax.rsqrt(var + eps)
    g = g_ref[...].astype(jnp.float32)                       # (C, 1)
    b = b_ref[...].astype(jnp.float32)                       # (C, 1)
    y = (x - mean) * inv * g + b
    o_ref[0] = y.astype(o_ref.dtype)


def layer_norm(x, g, b=None, *, t_hw=1024):
    """x: (N, C, H, W) NCHW.  g: (1, C, 1, 1).  b: (1, C, 1, 1) or None."""
    N, C, H, W = x.shape
    HW = H * W
    # eps selection mirrors the torch module (fp32 -> 1e-5, else 1e-3)
    eps = 1e-5 if x.dtype == jnp.float32 else 1e-3
    inv_c = 1.0 / C

    # Lane tile: multiple of 128, as large as possible but capped so the
    # (double-buffered) in/out blocks + f32 working set stay well inside VMEM.
    itemsize = jnp.dtype(x.dtype).itemsize
    bytes_per_col = C * (4 * itemsize + 2 * 4)      # 2x dbl-buffered io + f32 temps
    vmem_budget = 12 * 1024 * 1024
    max_t = max(128, (vmem_budget // bytes_per_col) // 128 * 128)
    hw_pad128 = pl.cdiv(HW, 128) * 128
    T = min(t_hw, hw_pad128, max_t)

    x_r = x.reshape(N, C, HW)                       # metadata-only reshape
    g_r = g.reshape(C, 1)

    grid = (N, pl.cdiv(HW, T))                      # ragged edge handled by Pallas
    x_spec = pl.BlockSpec((1, C, T), lambda n, t: (n, 0, t))
    p_spec = pl.BlockSpec((C, 1), lambda n, t: (0, 0))
    o_spec = pl.BlockSpec((1, C, T), lambda n, t: (n, 0, t))

    if b is None:
        kernel = functools.partial(_ln_kernel_nobias, eps=eps, inv_c=inv_c)
        in_specs = [x_spec, p_spec]
        operands = (x_r, g_r)
    else:
        kernel = functools.partial(_ln_kernel_bias, eps=eps, inv_c=inv_c)
        in_specs = [x_spec, p_spec, p_spec]
        operands = (x_r, g_r, b.reshape(C, 1))

    out = pl.pallas_call(
        kernel,
        grid=grid,
        in_specs=in_specs,
        out_specs=o_spec,
        out_shape=jax.ShapeDtypeStruct((N, C, HW), x.dtype),
        compiler_params=pltpu.CompilerParams(
            dimension_semantics=("parallel", "parallel")),
    )(*operands)

    return out.reshape(N, C, H, W)


def _reference(x, g, b=None):
    eps = 1e-5 if x.dtype == jnp.float32 else 1e-3
    mean = jnp.mean(x, axis=1, keepdims=True)
    var = jnp.mean((x - mean) ** 2, axis=1, keepdims=True)
    out = (x - mean) * jax.lax.rsqrt(var + eps) * g
    if b is not None:
        out = out + b
    return out


if __name__ == "__main__":
    key = jax.random.PRNGKey(0)
    k_x, k_b = jax.random.split(key)

    N, C, H, W = 2, 4, 16, 16
    x = jax.random.normal(k_x, (N, C, H, W), dtype=jnp.float32)

    # Module default: g = ones(1, dim, 1, 1); bias=False -> b is None.
    g = jnp.ones((1, C, 1, 1), dtype=jnp.float32)
    b = None

    out = layer_norm(x, g, b)
    out = jax.block_until_ready(out)
    ref = _reference(x, g, b)
    assert out.shape == (N, C, H, W)
    assert jnp.allclose(out, ref, atol=1e-5, rtol=1e-5)

    # Also exercise the bias=True variant of the module.
    b2 = jax.random.normal(k_b, (1, C, 1, 1), dtype=jnp.float32) * 0.1
    out2 = jax.block_until_ready(layer_norm(x, g, b2))
    ref2 = _reference(x, g, b2)
    assert jnp.allclose(out2, ref2, atol=1e-5, rtol=1e-5)

    # Non-multiple-of-128 spatial size exercises the ragged-tile path.
    H3, W3 = 9, 11
    x3 = jax.random.normal(k_x, (N, C, H3, W3), dtype=jnp.float32)
    out3 = jax.block_until_ready(layer_norm(x3, g, b2))
    ref3 = _reference(x3, g, b2)
    assert jnp.allclose(out3, ref3, atol=1e-5, rtol=1e-5)

    print("KERNEL_OK")
</pallas_src>

<mosaic_0001>
module attributes {stable_mosaic.version = 11 : i64} {
  func.func @_ln_kernel_nobias(%arg0: i32, %arg1: i32, %arg2: memref<1x4x256xf32, #tpu.memory_space<vmem>>, %arg3: memref<4x1xf32, #tpu.memory_space<vmem>>, %arg4: memref<1x4x256xf32, #tpu.memory_space<vmem>>) attributes {dimension_semantics = [#tpu.dimension_semantics<parallel>, #tpu.dimension_semantics<parallel>], iteration_bounds = array<i64: 2, 1>, scalar_prefetch = 0 : i64, scratch_operands = 0 : i64, tpu.core_type = #tpu.core_type<tc>, window_params = [{transform_indices = @transform_0, window_bounds = array<i64: 1, 4, 256>}, {pipeline_mode = #tpu.pipeline_mode<synchronous>, transform_indices = @transform_1, window_bounds = array<i64: 4, 1>}, {transform_indices = @transform_2, window_bounds = array<i64: 1, 4, 256>}]} {
    %c0 = arith.constant 0 : index
    %c0_0 = arith.constant 0 : index
    %c0_1 = arith.constant 0 : index
    %0 = vector.load %arg2[%c0, %c0_0, %c0_1] : memref<1x4x256xf32, #tpu.memory_space<vmem>>, vector<1x4x256xf32>
    %1 = vector.shape_cast %0 : vector<1x4x256xf32> to vector<4x256xf32>
    %cst = arith.constant dense<0.000000e+00> : vector<256xf32>
    %2 = vector.multi_reduction <add>, %1, %cst [0] : vector<4x256xf32> to vector<256xf32>
    %3 = vector.shape_cast %2 : vector<256xf32> to vector<1x256xf32>
    %cst_2 = arith.constant 2.500000e-01 : f32
    %4 = vector.broadcast %cst_2 : f32 to vector<1x256xf32>
    %5 = arith.mulf %3, %4 : vector<1x256xf32>
    %6 = arith.mulf %1, %1 : vector<4x256xf32>
    %cst_3 = arith.constant dense<0.000000e+00> : vector<256xf32>
    %7 = vector.multi_reduction <add>, %6, %cst_3 [0] : vector<4x256xf32> to vector<256xf32>
    %8 = vector.shape_cast %7 : vector<256xf32> to vector<1x256xf32>
    %cst_4 = arith.constant 2.500000e-01 : f32
    %9 = vector.broadcast %cst_4 : f32 to vector<1x256xf32>
    %10 = arith.mulf %8, %9 : vector<1x256xf32>
    %11 = arith.mulf %5, %5 : vector<1x256xf32>
    %12 = arith.subf %10, %11 : vector<1x256xf32>
    %cst_5 = arith.constant 0.000000e+00 : f32
    %13 = vector.broadcast %cst_5 : f32 to vector<1x256xf32>
    %14 = arith.maximumf %12, %13 : vector<1x256xf32>
    %cst_6 = arith.constant 9.99999974E-6 : f32
    %15 = vector.broadcast %cst_6 : f32 to vector<1x256xf32>
    %16 = arith.addf %14, %15 : vector<1x256xf32>
    %17 = math.rsqrt %16 : vector<1x256xf32>
    %c0_7 = arith.constant 0 : index
    %c0_8 = arith.constant 0 : index
    %18 = vector.load %arg3[%c0_7, %c0_8] : memref<4x1xf32, #tpu.memory_space<vmem>>, vector<4x1xf32>
    %19 = vector.broadcast %5 : vector<1x256xf32> to vector<4x256xf32>
    %20 = arith.subf %1, %19 : vector<4x256xf32>
    %21 = vector.broadcast %17 : vector<1x256xf32> to vector<4x256xf32>
    %22 = arith.mulf %20, %21 : vector<4x256xf32>
    %23 = vector.broadcast %18 : vector<4x1xf32> to vector<4x256xf32>
    %24 = arith.mulf %22, %23 : vector<4x256xf32>
    %c0_9 = arith.constant 0 : index
    %c0_10 = arith.constant 0 : index
    %c0_11 = arith.constant 0 : index
    %25 = vector.load %arg4[%c0_9, %c0_10, %c0_11] : memref<1x4x256xf32, #tpu.memory_space<vmem>>, vector<1x4x256xf32>
    %26 = vector.shape_cast %25 : vector<1x4x256xf32> to vector<4x256xf32>
    %27 = vector.shape_cast %24 : vector<4x256xf32> to vector<1x4x256xf32>
    tpu.vector_store %arg4[%c0_9, %c0_10, %c0_11], %27 {strides = array<i32>} : memref<1x4x256xf32, #tpu.memory_space<vmem>>, vector<1x4x256xf32>,
    return
  }
  func.func @transform_0(%arg0: i32, %arg1: i32) -> (i32, i32, i32) {
    %c0_i32 = arith.constant 0 : i32
    %c0_i32_0 = arith.constant 0 : i32
    return %arg0, %c0_i32, %arg1 : i32, i32, i32
  }
  func.func @transform_1(%arg0: i32, %arg1: i32) -> (i32, i32) {
    %c0_i32 = arith.constant 0 : i32
    %c0_i32_0 = arith.constant 0 : i32
    %c0_i32_1 = arith.constant 0 : i32
    return %c0_i32, %c0_i32_0 : i32, i32
  }
  func.func @transform_2(%arg0: i32, %arg1: i32) -> (i32, i32, i32) {
    %c0_i32 = arith.constant 0 : i32
    %c0_i32_0 = arith.constant 0 : i32
    return %arg0, %c0_i32, %arg1 : i32, i32, i32
  }
}

</mosaic_0001>

<bundles_post_ra>
// kernel: tpu_custom_call.1
= control target key start
LH: loop header
LB: loop body
LE: loop exit
PB: predicated region body
PF: predicated region fallthrough
CT: control target
= control target key end

     0   :  { %7 = vsyncpa [#allocation3], 0  ;;  %s740_s0 = inlined_call_operand.hbm [shape: f32[2,4,256], index: 0, kind: input, shape index: {}]   ;;  %s741_s1 = inlined_call_operand.vmem [shape: f32[4,1], index: 1, kind: input, shape index: {}]   ;;  %s742_s2 = inlined_call_operand.hbm [shape: f32[2,4,256], index: 2, kind: output, shape index: {}]  }
   0x1   :  { %9 = vsyncpa [#allocation3 + $0x1], 0 }
   0x2   :  { %10 = vsyncpa [#allocation4], 0 }
   0x3   :  { %12 = vsyncpa [#allocation4 + $0x1], 0  ;;  %s601_s9 = smov 0   ;;  %s603_s10 = smov 0  }
   0x4   :  { %s605_s11 = smov 0   ;;  %s607_s12 = smov 0  }
   0x5   :  { %s609_s13 = smov 0   ;;  %s611_s14 = smov 0  }
   0x6 LB: > { %s384_s15 = sadd.s32 4294967295, %s582_s14   ;;  %s385_s16 = sadd.s32 4294967294, %s582_s14   ;;  %s582_s14 = sphi %s611_s14, %s18_s14   ;;  %s578_s13 = sphi %s609_s13, %s751_s13   ;;  %s574_s12 = sphi %s607_s12, %s750_s12   ;;  %s570_s11 = sphi %s605_s11, %s749_s11   ;;  %s566_s10 = sphi %s603_s10, %s748_s10   ;;  %s562_s9 = sphi %s601_s9, %s747_s9  }
   0x7   : > { %s30_s17 = sadd.s32 1, %s578_s13  ;;  %s39_s18 = sadd.s32 1, %s570_s11 }
   0x8   : > { %p32_p0 = scmp.ge.s32.totalorder %s30_s17, 2  ;;  %p46_p1 = scmp.ne.s32.totalorder %s570_s11, %s566_s10 }
   0x9   : > { %p47_p2 = scmp.eq.s32.totalorder %s582_s14, 0  ;;  %p52_p3 = scmp.ne.s32.totalorder %s566_s10, %s562_s9 }
   0xa   : > { %s753_s17 = smov (%p32_p0, %s30_s17), 0  ;;  %p53_p5 = scmp.eq.s32.totalorder %s384_s15, 0 }
   0xb   : > { %p642_p4 = por %p47_p2, %p46_p1  ;;  %s34_s20 = ssub.s32 %s578_s13, %s753_s17 }
   0xc   : > { %p99_p6 = scmp.eq.s32.totalorder %s384_s15, 1  ;;  %p37_p7 = scmp.eq.s32.totalorder %s34_s20, 0 }
   0xd   : > { %p648_p8 = por %p53_p5, %p52_p3  ;;  %p105_p10 = scmp.eq.s32.totalorder %s385_s16, 1 }
   0xe   : > { %p652_p9 = por %p99_p6, %p46_p1  ;;  %p387_p12 = scmp.ge.s32.totalorder %s582_s14, 2 }
   0xf   : > { %s657_s23 = scalar_select %p37_p7, %s570_s11, %s39_s18  }
  0x10   : > { %p659_p11 = por %p105_p10, %p52_p3  ;;  %p413_p13 = scmp.lt.s32.totalorder %s582_s14, 2 }
  0x11   : > { %s128_s25 = sand.u32 1, %s570_s11   ;;  %s399_s27 = sshll.u32 %s578_s13, 3 }
  0x12   : > { %s388_s26 = sshll.u32 %s128_s25, 3  ;;  %s139_s30 = scalar_lea.hbm %s740_s0, %s399_s27 }
  0x13   : > { %s132_s3 = scalar_lea.vmem [#allocation2], %s388_s26  ;;  %s141_s5 = sshll.u32 %s139_s30, 4  ;;  %s142_s5 = int_to_ptr.hbm [resolvable:$true] %s141_s5 }
  0x14   : > { %s143_s4 = sshll.u32 %s132_s3, 4  ;;  %p406_p0 = pnand %p413_p13, %p642_p4  ;;  %s144_s4 = int_to_ptr.vmem [resolvable:$true] %s143_s4 }
  0x15   : > { %p391_p1 = scmp.ge.s32.totalorder %s582_s14, 1  ;;  %p148_p2 = scmp.lt.s32.totalorder %s582_s14, 3 }
  0x16   : > { %s129_s6 = scalar_lea.sflag [#allocation3], %s128_s25 }
  0x17   : > { %408 = dma.hbm_to_vmem [thread:$0]  (!%p406_p0), %s142_s5, 128, %s144_s4, %s129_s6  }
  0x18   : > { %p149_p3 = pnand %p391_p1, %p148_p2 }
  0x19   : > { %s675_s7 = sand.u32 (!%p149_p3), 1, %s566_s10  }
  0x1a   : > { %152 = sbr.rel (%p149_p3) target bundleno = 156 (0x9c), region = 28  ;;  %s392_s8 = sshll.u32 (!%p149_p3), %s675_s7, 3 }
  0x1b   : > { %s155_s15 = scalar_lea.sflag (!%p149_p3), [#allocation3], %s675_s7  ;;  %s158_s16 = scalar_lea.vmem (!%p149_p3), [#allocation2], %s392_s8 }
  0x1f   : > { %553 = dma.done.wait (%p648_p8), %s155_s15, 128  }
  0x20   : > { %555 = vsyncadd (%p648_p8), %s155_s15, 4294967168  ;;  %v584_v0 = vmov 0   ;;  %v257_v1 = vld [vmem:[%s741_s1] sm:$0xf]  ;;  %v688_v2 = vld [vmem:[%s158_s16] sm:$0xff]  ;;  %vm189_vm0 = vcmask 1043456  }
  0x21   : > { %465 = vset.pattern.permute.xlu0 %v584_v0  ;;  %184 = vst [vmem:[#allocation1] ss:$2 sm:$0xff] %v688_v2  ;;  %v206_v3 = vmul.f32 %v688_v2, %v688_v2  ;;  %v585_v0 = vmov 839922192   ;;  %s400_s20 = sshll.u32 %s574_s12, 3  ;;  %s179_s27 = scalar_lea.vmem [#allocation5], %s392_s8 }
  0x22   : > { %272 = vperm.xlu0 %465, %v257_v1   ;;  %v275_v1 = vunpack.c.l.s4 %v585_v0  ;;  %s295_s26 = scalar_lea.hbm %s742_s2, %s400_s20  ;;  %s297_s28 = sshll.u32 %s179_s27, 4  ;;  %s298_s28 = int_to_ptr.vmem [resolvable:$true] %s297_s28 }
  0x23   : > { %s299_s29 = sshll.u32 %s295_s26, 4  ;;  %s282_s12 = scalar_lea.sflag [#allocation4], %s675_s7  ;;  %s300_s29 = int_to_ptr.hbm [resolvable:$true] %s299_s29 }
  0x24   : > { %s514_s30 = sshra.s32 %s300_s29, 4  ;;  %s520_s6 = scalar_lea.hbm %s742_s2, 16  ;;  %s515_s30 = int_to_ptr.hbm [resolvable:$true] %s514_s30 }
  0x25   : > { %s516_s3 = scalar_lea.hbm %s515_s30, 8  ;;  %p521_p7 = scmp.lt.s32.totalorder %s515_s30, %s742_s2 }
  0x26   : > { %p517_p4 = scmp.ne.s32.totalorder %s515_s30, %s516_s3  ;;  %p522_p8 = scmp.lt.s32.totalorder %s520_s6, %s516_s3 }
  0x28   : > { %v185_v4 = vld.sshfl [vmem:[#allocation1] sm:$0xff pattern:$0x75316420]  ;;  %v186_v5 = vld.sshfl [vmem:[#allocation1 + $0x8] sm:$0xff pattern:$0x75316420]  ;;  %p518_p5 = pnand %p517_p4, %p652_p9  ;;  %p523_p10 = por %p522_p8, %p521_p7 }
  0x29   : > { %208 = vst [vmem:[#allocation1] ss:$2 sm:$0xff] %v206_v3  ;;  %v197_v6 = vsel %vm189_vm0, %v186_v5, 0.0  ;;  %v190_v9 = vsel %vm189_vm0, %v185_v4, 0.0 }
  0x2a   : > { %v198_v7 = vrot.slane %v197_v6, 4  ;;  %v191_v11 = vrot.slane %v190_v9, 4  ;;  %p519_p6 = pneg %p518_p5 }
  0x2c   : > { %v199_v12 = vadd.f32 %v198_v7, %v197_v6  ;;  %v192_v16 = vadd.f32 %v191_v11, %v190_v9  ;;  %v276_v6 = vunpack.c.0.s8 %v275_v1  ;;  %p524_p13 = pnand %p523_p10, %p519_p6 }
  0x2e   : > { %v200_v17 = vrot.slane %v199_v12, 2  ;;  %v193_v20 = vrot.slane %v192_v16, 2 }
  0x30   : > { %v210_v8 = vld.sshfl [vmem:[#allocation1 + $0x8] sm:$0xff pattern:$0x75316420]  ;;  %v209_v13 = vld.sshfl [vmem:[#allocation1] sm:$0xff pattern:$0x75316420]  ;;  %v201_v21 = vadd.f32 %v200_v17, %v199_v12  ;;  %v194_v24 = vadd.f32 %v193_v20, %v192_v16 }
  0x31   : > { %v220_v10 = vsel %vm189_vm0, %v210_v8, 0.0  ;;  %v213_v15 = vsel %vm189_vm0, %v209_v13, 0.0 }
  0x32   : > { %v221_v14 = vrot.slane %v220_v10, 4  ;;  %v214_v18 = vrot.slane %v213_v15, 4  ;;  %v202_v25 = vrot.slane %v201_v21, 1  ;;  %v195_v28 = vrot.slane %v194_v24, 1 }
  0x34   : > { %v222_v19 = vadd.f32 %v221_v14, %v220_v10  ;;  %v215_v22 = vadd.f32 %v214_v18, %v213_v15  ;;  %v203_v29 = vadd.f32 %v202_v25, %v201_v21  ;;  %v196_v32 = vadd.f32 %v195_v28, %v194_v24 }
  0x36   : > { %v223_v23 = vrot.slane %v222_v19, 2  ;;  %v216_v26 = vrot.slane %v215_v22, 2  ;;  %v205_v33 = vmul.f32 0.25, %v203_v29  ;;  %v204_v36 = vmul.f32 0.25, %v196_v32 }
  0x38   : > { %v224_v27 = vadd.f32 %v223_v23, %v222_v19  ;;  %v217_v30 = vadd.f32 %v216_v26, %v215_v22  ;;  %v230_v39 = vmul.f32 %v205_v33, %v205_v33  ;;  %v229_v41 = vmul.f32 %v204_v36, %v204_v36 }
  0x39   : > { %v260_v59 = vrot.slane %v205_v33, 4 }
  0x3a   : > { %v225_v31 = vrot.slane %v224_v27, 1  ;;  %v218_v34 = vrot.slane %v217_v30, 1 }
  0x3b   : > { %v261_v62 = vsel %vm189_vm0, %v204_v36, %v260_v59 }
  0x3c   : > { %v226_v35 = vadd.f32 %v225_v31, %v224_v27  ;;  %v219_v37 = vadd.f32 %v218_v34, %v217_v30  ;;  %v263_v4 = vsub.f32 %v688_v2, %v261_v62 }
  0x3e   : > { %v228_v38 = vmul.f32 0.25, %v226_v35  ;;  %v227_v40 = vmul.f32 0.25, %v219_v37 }
  0x40   : > { %v232_v42 = vsub.f32 %v228_v38, %v230_v39  ;;  %v231_v43 = vsub.f32 %v227_v40, %v229_v41 }
  0x42   : > { %v234_v44 = vmax.f32 %v232_v42, 0.0  ;;  %v233_v45 = vmax.f32 %v231_v43, 0.0 }
  0x44   : > { %v236_v46 = vadd.f32 1e-05, %v234_v44  ;;  %v235_v47 = vadd.f32 1e-05, %v233_v45 }
  0x46   : > { %466 = vrsqrt.f32 %v236_v46  ;;  %vm253_vm1 = vweird.f32 %v236_v46  ;;  %vm243_vm4 = vweird.f32 %v235_v47 }
  0x47   : > { %468 = vrsqrt.f32 %v235_v47 }
  0x4c   : > { %v467_v48 = vpop.eup %466 }
  0x4d   : > { %v248_v49 = vmul.f32 %v467_v48, %v236_v46  ;;  %v469_v50 = vpop.eup %468  ;;  %vm254_vm2 = vweird.f32 %v467_v48 }
  0x4e   : > { %v238_v51 = vmul.f32 %v469_v50, %v235_v47  ;;  %vm255_vm3 = vmor %vm253_vm1, %vm254_vm2  ;;  %vm244_vm5 = vweird.f32 %v469_v50 }
  0x4f   : > { %v249_v52 = vmul.f32 %v467_v48, %v248_v49  ;;  %vm245_vm6 = vmor %vm243_vm4, %vm244_vm5 }
  0x50   : > { %v239_v53 = vmul.f32 %v469_v50, %v238_v51 }
  0x51   : > { %v250_v54 = vmul.f32 0.5, %v249_v52 }
  0x52   : > { %v240_v55 = vmul.f32 0.5, %v239_v53 }
  0x53   : > { %v251_v56 = vsub.f32 1.5, %v250_v54 }
  0x54   : > { %v241_v57 = vsub.f32 1.5, %v240_v55 }
  0x55   : > { %v252_v58 = vmul.f32 %v467_v48, %v251_v56 }
  0x56   : > { %v242_v60 = vmul.f32 %v469_v50, %v241_v57 }
  0x57   : > { %v256_v61 = vsel %vm255_vm3, %v467_v48, %v252_v58 }
  0x58   : > { %v266_v63 = vrot.slane %v256_v61, 4  ;;  %v246_v3 = vsel %vm245_vm6, %v469_v50, %v242_v60 }
  0x5a   : > { %v267_v5 = vsel %vm189_vm0, %v246_v3, %v266_v63 }
  0x5b   : > { %v269_v7 = vmul.f32 %v267_v5, %v263_v4 }
  0x94   : > { %v273_v8 = vpop.permute.xlu0 %272 }
  0x95   : > { %v277_v9 = vperm.slane %v273_v8, %v276_v6 }
  0x97   : > { %v279_v10 = vmul.f32 %v277_v9, %v269_v7 }
  0x99   : > { %280 = vst [vmem:[%s179_s27] sm:$0xff] %v279_v10 }
  0x9a   : > { %527 = shalt.err (!%p524_p13)
}
  0x9b   : > { %403 = dma.vmem_to_hbm [thread:$0]  (%p652_p9), %s298_s28, 128, %s300_s29, %s282_s12  }
  0x9c PF: > { %s311_s7 = sand.u32 1, %s562_s9   ;;  %p410_p0 = pnand %p387_p12, %p659_p11 }
  0x9d   : > { %s312_s16 = scalar_lea.sflag [#allocation4], %s311_s7 }
  0x9e   : > { %p411_p1 = pneg %p410_p0 }
  0xa0   : > { %557 = dma.done.wait (%p411_p1), %s312_s16, 128  }
  0xa1   : > { %559 = vsyncadd (%p411_p1), %s312_s16, 4294967168  ;;  %s18_s14 = sadd.s32 1, %s582_s14   ;;  %s747_s9 = smov %s566_s10 }
  0xa2   : > { %p15_p2 = scmp.ge.s32.totalorder %s18_s14, 4   ;;  %s748_s10 = smov %s570_s11 }
  0xa3   : > { %s749_s11 = smov %s657_s23  ;;  %s750_s12 = smov %s578_s13 }
  0xa4   : > { %s751_s13 = smov %s753_s17  ;;  %17 = sbr.rel (!%p15_p2) target bundleno = 6 (0x6), region = 73 }
  0xa9   :  { %318 = vsyncpa [#allocation3], 1 }
  0xaa   :  { %320 = vsyncpa [#allocation3 + $0x1], 1 }
  0xab   :  { %321 = vsyncpa [#allocation4], 1 }
  0xac   :  { %323 = vsyncpa [#allocation4 + $0x1], 1 }

</bundles_post_ra>
